<compile_context>
chip_gen: v5e
topology: v5e:2x2
jax: 0.10.0
libtpu: 0.0.40
codegen_flags: <defaults>
</compile_context>

<pallas_src>
import jax
import jax.numpy as jnp
from jax.experimental import pallas as pl
from jax.experimental.pallas import tpu as pltpu


def _round_up(x: int, m: int) -> int:
    return (x + m - 1) // m * m


def _vmem_limit_bytes() -> int:
    """Per-generation VMEM budget (96 MiB on 128-MiB chips, ~48 MiB on v7x)."""
    try:
        cap = pltpu.get_tpu_info().vmem_capacity_bytes
    except Exception:
        cap = 128 * 1024 * 1024
    return max(32 * 1024 * 1024, min(96 * 1024 * 1024, int(cap) * 3 // 4))


# ---------------------------------------------------------------------------
# One-time (init-time) parameter preparation — do NOT call per forward pass.
# ---------------------------------------------------------------------------
def prepare_text_embedder_params(w, b, drop_emb):
    """w: [D_in, H] f32 (transposed torch Linear weight); b, drop_emb: [H] f32.

    Returns cached, TPU-ready params: bf16 weight padded to H_pad (mult. of
    128) and a single (2, H_pad) f32 array holding [bias; null embedding].
    """
    D_in, H = w.shape
    H_pad = _round_up(H, 128)
    w_bf16 = jnp.zeros((D_in, H_pad), jnp.bfloat16).at[:, :H].set(
        w.astype(jnp.bfloat16))
    be = jnp.zeros((2, H_pad), jnp.float32)
    be = be.at[0, :H].set(b.astype(jnp.float32))
    be = be.at[1, :H].set(drop_emb.astype(jnp.float32))
    return {"w_bf16": w_bf16, "be_f32": be, "D_in": D_in, "H": H, "H_pad": H_pad}


# ---------------------------------------------------------------------------
# Kernels
# ---------------------------------------------------------------------------
def _linear_select_kernel(mask_ref, x_ref, w_ref, be_ref, o_ref):
    """out_tile = where(drop, null_emb, x_tile @ W_tile + bias).

    mask_ref: [tm, 1]    f32, 1.0 => rand < p (train) else 0.0
    x_ref:    [tm, D_in] bf16 (K unblocked -> each tile sees the full row)
    w_ref:    [D_in, tn] bf16
    be_ref:   [2, tn]    f32  (row 0 = bias, row 1 = null embedding)
    o_ref:    [tm, tn]
    """
    x = x_ref[...]
    linear = jnp.dot(x, w_ref[...],
                     preferred_element_type=jnp.float32) + be_ref[0:1, :]
    # NaN rows: detected in-kernel (VPU/XLU, hidden under MXU+DMA).  NaNs do
    # flow through the MXU but are removed by the true vector select below —
    # do NOT refactor this into an arithmetic blend (mask*a + (1-mask)*b).
    nan_any = jnp.max(jnp.where(jnp.isnan(x),
                                jnp.float32(1.0), jnp.float32(0.0)),
                      axis=1, keepdims=True)                       # [tm, 1]
    drop = (nan_any + mask_ref[...]) > 0.5                         # [tm, 1]
    o_ref[...] = jnp.where(drop, be_ref[1:2, :], linear).astype(o_ref.dtype)


def _broadcast_drop_kernel(be_ref, o_ref):
    """Unconditioned path: every row gets the learned null embedding."""
    o_ref[...] = jnp.broadcast_to(be_ref[1:2, :],
                                  o_ref.shape).astype(o_ref.dtype)


# ---------------------------------------------------------------------------
# Tile selection
# ---------------------------------------------------------------------------
def _pick_tiles(B, D_in, H_pad, out_bytes, vmem_limit):
    # tm: 256 fills the 256-wide MXUs (v6e/v7x) when B is large; otherwise a
    # single sublane-aligned tile.
    tm = 256 if B >= 256 else _round_up(max(B, 1), 8)
    B_pad = _round_up(B, tm)
    K_vmem = _round_up(D_in, 128)          # lane padding of the x VMEM buffer
    budget = int(vmem_limit * 0.6)         # headroom for internal scratch
    tn = 128
    for cand in (1024, 512, 256, 128):
        if cand > H_pad or H_pad % cand != 0:
            continue
        need = (2 * D_in * cand * 2          # W double buffer (bf16)
                + 2 * tm * K_vmem * 2        # x double buffer (bf16)
                + 2 * tm * cand * out_bytes  # out double buffer
                + 2 * 2 * cand * 4           # [bias; null emb]
                + 2 * tm * 128 * 4)          # mask (lane padded)
        if need <= budget:
            tn = cand
            break
    # TODO(synk): for very large D_in (>~12k) a K grid axis with an f32
    # accumulator would be needed to keep the W double buffer under VMEM.
    # v7x megacore: avoid a degenerate (1, 1) grid when H can be split.
    if B_pad // tm == 1 and H_pad // tn == 1 and H_pad >= 256:
        for cand in (512, 256, 128):
            if cand <= H_pad // 2 and H_pad % cand == 0:
                tn = cand
                break
    return tm, tn, B_pad


# ---------------------------------------------------------------------------
# Forward wrapper
# ---------------------------------------------------------------------------
def text_embedder_forward(text_emb, rand_vals, params, *,
                          train: bool, unconditioned: bool,
                          dropout_prob: float):
    """text_emb: [B, D_in] f32; rand_vals: [B] f32 in [0,1);
       params: output of prepare_text_embedder_params (cached)."""
    B, D_in = text_emb.shape
    assert D_in == params["D_in"]
    H, H_pad = params["H"], params["H_pad"]
    w_p, be_p = params["w_bf16"], params["be_f32"]
    out_dtype = text_emb.dtype
    out_bytes = jnp.dtype(out_dtype).itemsize
    vmem_limit = _vmem_limit_bytes()

    # ---- unconditioned: pure broadcast-store, no weight DMA / matmul ----
    if unconditioned:
        tn = 128
        for cand in (1024, 512, 256, 128):
            if cand <= H_pad and H_pad % cand == 0:
                tn = cand
                break
        out_p = pl.pallas_call(
            _broadcast_drop_kernel,
            out_shape=jax.ShapeDtypeStruct((B, H_pad), out_dtype),
            grid=(H_pad // tn,),
            in_specs=[pl.BlockSpec((2, tn), lambda j: (0, j))],
            out_specs=pl.BlockSpec((B, tn), lambda j: (0, j)),
            compiler_params=pltpu.CompilerParams(
                dimension_semantics=("parallel",),
                vmem_limit_bytes=vmem_limit),
        )(be_p)
        return out_p[:, :H]

    # ---- conditioned path ----
    tm, tn, B_pad = _pick_tiles(B, D_in, H_pad, out_bytes, vmem_limit)
    num_i = B_pad // tm                       # B tiles (inner grid axis)
    num_j = H_pad // tn                       # H tiles (outer grid axis)

    # Activations: bf16 cast only (K left unpadded; pad B only if needed).
    x_bf16 = text_emb.astype(jnp.bfloat16)
    if B_pad != B:
        x_bf16 = jnp.zeros((B_pad, D_in), jnp.bfloat16).at[:B].set(x_bf16)

    # Only the rand<p bit is passed in; the NaN bit is computed in-kernel.
    if train:
        rand_bit = (rand_vals <
                    jnp.asarray(dropout_prob, rand_vals.dtype)).astype(jnp.float32)
    else:
        rand_bit = jnp.zeros((B,), jnp.float32)
    mask = rand_bit[:, None]
    if B_pad != B:
        mask = jnp.zeros((B_pad, 1), jnp.float32).at[:B].set(mask)

    cost = pl.CostEstimate(
        flops=2 * B_pad * D_in * H_pad,
        transcendentals=0,
        bytes_accessed=(B_pad * 4                      # mask
                        + B_pad * D_in * 2 * num_j     # x, re-read per H tile
                        + D_in * H_pad * 2             # W, single pass
                        + 2 * H_pad * 4                # bias + null embedding
                        + B_pad * H_pad * out_bytes))  # output

    out_p = pl.pallas_call(
        _linear_select_kernel,
        out_shape=jax.ShapeDtypeStruct((B_pad, H_pad), out_dtype),
        grid=(num_j, num_i),               # B innermost -> W tile stays resident
        in_specs=[
            pl.BlockSpec((tm, 1),    lambda j, i: (i, 0)),   # rand-drop mask
            pl.BlockSpec((tm, D_in), lambda j, i: (i, 0)),   # x (K unblocked)
            pl.BlockSpec((D_in, tn), lambda j, i: (0, j)),   # W (resident over i)
            pl.BlockSpec((2, tn),    lambda j, i: (0, j)),   # [bias; null emb]
        ],
        out_specs=pl.BlockSpec((tm, tn), lambda j, i: (i, j)),
        compiler_params=pltpu.CompilerParams(
            dimension_semantics=("parallel", "parallel"),
            vmem_limit_bytes=vmem_limit),
        cost_estimate=cost,
    )(mask, x_bf16, w_p, be_p)
    return out_p[:B, :H]


# ---------------------------------------------------------------------------
# Pure-JAX reference (mirrors the PyTorch forward; uses the same bf16-rounded
# operands as the kernel so tolerances can be tight).
# ---------------------------------------------------------------------------
def _reference(text_emb, rand_vals, w, b, drop_emb, *, train, unconditioned,
               dropout_prob):
    B = text_emb.shape[0]
    H = w.shape[1]
    if unconditioned:
        drop = jnp.ones((B,), dtype=bool)
    else:
        drop = jnp.any(jnp.isnan(text_emb), axis=1)
        if train:
            drop = drop | (rand_vals < dropout_prob)
    xb = jnp.nan_to_num(text_emb).astype(jnp.bfloat16).astype(jnp.float32)
    wb = w.astype(jnp.bfloat16).astype(jnp.float32)
    linear = xb @ wb + b.reshape(1, H)
    return jnp.where(drop[:, None], drop_emb.reshape(1, H),
                     linear).astype(text_emb.dtype)


if __name__ == "__main__":
    # small shapes consistent with the module
    B, D_in, H = 8, 16, 32
    dropout_prob = 0.5

    key = jax.random.PRNGKey(0)
    k_x, k_w, k_b, k_e, k_r = jax.random.split(key, 5)

    text_emb = jax.random.normal(k_x, (B, D_in), dtype=jnp.float32)
    # two rows contain NaN to exercise the isnan drop path
    text_emb = text_emb.at[1, 3].set(jnp.nan)
    text_emb = text_emb.at[5, 0].set(jnp.nan)

    # nn.Linear weight is [H, D_in]; store transposed as [D_in, H]
    w_torch = jax.random.normal(k_w, (H, D_in), dtype=jnp.float32) / (D_in ** 0.5)
    w = w_torch.T                                                   # [D_in, H]
    b = jax.random.normal(k_b, (H,), dtype=jnp.float32) * 0.01      # [H]
    drop_emb = jax.random.normal(k_e, (H,), dtype=jnp.float32)      # [H]

    # deterministic stand-in for torch.rand(B)
    rand_vals = jax.random.uniform(k_r, (B,), dtype=jnp.float32)

    # one-time parameter preparation (hoisted out of the per-call path)
    params = prepare_text_embedder_params(w, b, drop_emb)

    # ---- conditioned / train branch ----
    out = text_embedder_forward(text_emb, rand_vals, params,
                                train=True, unconditioned=False,
                                dropout_prob=dropout_prob)
    out = jax.block_until_ready(out)
    ref = _reference(text_emb, rand_vals, w, b, drop_emb,
                     train=True, unconditioned=False,
                     dropout_prob=dropout_prob)
    assert out.shape == (B, H)
    assert jnp.allclose(out, ref, atol=1e-3, rtol=1e-3), "train branch mismatch"

    # ---- conditioned / eval branch ----
    out_e = text_embedder_forward(text_emb, rand_vals, params,
                                  train=False, unconditioned=False,
                                  dropout_prob=dropout_prob)
    out_e = jax.block_until_ready(out_e)
    ref_e = _reference(text_emb, rand_vals, w, b, drop_emb,
                       train=False, unconditioned=False,
                       dropout_prob=dropout_prob)
    assert jnp.allclose(out_e, ref_e, atol=1e-3, rtol=1e-3), "eval branch mismatch"

    # ---- unconditioned branch (broadcast-only kernel) ----
    out_u = text_embedder_forward(text_emb, rand_vals, params,
                                  train=False, unconditioned=True,
                                  dropout_prob=dropout_prob)
    out_u = jax.block_until_ready(out_u)
    assert jnp.allclose(out_u, jnp.broadcast_to(drop_emb[None, :], (B, H)),
                        atol=1e-6), "unconditioned branch mismatch"

    print("KERNEL_OK")
</pallas_src>

<mosaic_0001>
module attributes {stable_mosaic.version = 11 : i64} {
  func.func @_linear_select_kernel(%arg0: i32, %arg1: i32, %arg2: memref<8x1xf32, #tpu.memory_space<vmem>>, %arg3: memref<8x16xbf16, #tpu.memory_space<vmem>>, %arg4: memref<16x128xbf16, #tpu.memory_space<vmem>>, %arg5: memref<2x128xf32, #tpu.memory_space<vmem>>, %arg6: memref<8x128xf32, #tpu.memory_space<vmem>>) attributes {dimension_semantics = [#tpu.dimension_semantics<parallel>, #tpu.dimension_semantics<parallel>], iteration_bounds = array<i64: 1, 1>, scalar_prefetch = 0 : i64, scratch_operands = 0 : i64, tpu.core_type = #tpu.core_type<tc>, window_params = [{transform_indices = @transform_0, window_bounds = array<i64: 8, 1>}, {transform_indices = @transform_1, window_bounds = array<i64: 8, 16>}, {transform_indices = @transform_2, window_bounds = array<i64: 16, 128>}, {transform_indices = @transform_3, window_bounds = array<i64: 2, 128>}, {transform_indices = @transform_4, window_bounds = array<i64: 8, 128>}]} {
    %c0 = arith.constant 0 : index
    %c0_0 = arith.constant 0 : index
    %0 = vector.load %arg3[%c0, %c0_0] : memref<8x16xbf16, #tpu.memory_space<vmem>>, vector<8x16xbf16>
    %c0_1 = arith.constant 0 : index
    %c0_2 = arith.constant 0 : index
    %1 = vector.load %arg4[%c0_1, %c0_2] : memref<16x128xbf16, #tpu.memory_space<vmem>>, vector<16x128xbf16>
    %cst = arith.constant dense<0.000000e+00> : vector<8x128xf32>
    %2 = tpu.matmul %0, %1, %cst {dimension_numbers = #tpu.dot_dimension_numbers<[1], [0], [0], [1], [0, 0, 1, 1], [], []>} : vector<8x16xbf16>, vector<16x128xbf16>, vector<8x128xf32> -> vector<8x128xf32>
    %c0_3 = arith.constant 0 : index
    %c0_4 = arith.constant 0 : index
    %3 = vector.load %arg5[%c0_3, %c0_4] : memref<2x128xf32, #tpu.memory_space<vmem>>, vector<1x128xf32>
    %4 = vector.broadcast %3 : vector<1x128xf32> to vector<8x128xf32>
    %5 = arith.addf %2, %4 : vector<8x128xf32>
    %6 = arith.cmpf one, %0, %0 : vector<8x16xbf16>
    %cst_5 = arith.constant 1.000000e+00 : f32
    %cst_6 = arith.constant 0.000000e+00 : f32
    %7 = vector.broadcast %cst_5 : f32 to vector<8x16xf32>
    %8 = vector.broadcast %cst_6 : f32 to vector<8x16xf32>
    %9 = arith.select %6, %7, %8 : vector<8x16xi1>, vector<8x16xf32>
    %cst_7 = arith.constant dense<0xFF800000> : vector<8xf32>
    %10 = vector.multi_reduction <maximumf>, %9, %cst_7 [1] : vector<8x16xf32> to vector<8xf32>
    %11 = vector.shape_cast %10 : vector<8xf32> to vector<8x1xf32>
    %c0_8 = arith.constant 0 : index
    %c0_9 = arith.constant 0 : index
    %12 = vector.load %arg2[%c0_8, %c0_9] : memref<8x1xf32, #tpu.memory_space<vmem>>, vector<8x1xf32>
    %13 = arith.addf %11, %12 : vector<8x1xf32>
    %cst_10 = arith.constant 5.000000e-01 : f32
    %14 = vector.broadcast %cst_10 : f32 to vector<8x1xf32>
    %15 = arith.cmpf ogt, %13, %14 : vector<8x1xf32>
    %c1 = arith.constant 1 : index
    %c0_11 = arith.constant 0 : index
    %16 = vector.load %arg5[%c1, %c0_11] : memref<2x128xf32, #tpu.memory_space<vmem>>, vector<1x128xf32>
    %17 = vector.shape_cast %15 : vector<8x1xi1> to vector<8x1xi1>
    %18 = vector.broadcast %17 : vector<8x1xi1> to vector<8x128xi1>
    %19 = vector.shape_cast %16 : vector<1x128xf32> to vector<1x128xf32>
    %20 = vector.broadcast %19 : vector<1x128xf32> to vector<8x128xf32>
    %21 = arith.select %18, %20, %5 : vector<8x128xi1>, vector<8x128xf32>
    %c0_12 = arith.constant 0 : index
    %c0_13 = arith.constant 0 : index
    %22 = vector.load %arg6[%c0_12, %c0_13] : memref<8x128xf32, #tpu.memory_space<vmem>>, vector<8x128xf32>
    tpu.vector_store %arg6[%c0_12, %c0_13], %21 {strides = array<i32>} : memref<8x128xf32, #tpu.memory_space<vmem>>, vector<8x128xf32>,
    return
  }
  func.func @transform_0(%arg0: i32, %arg1: i32) -> (i32, i32) {
    %c0_i32 = arith.constant 0 : i32
    %c0_i32_0 = arith.constant 0 : i32
    return %arg1, %c0_i32 : i32, i32
  }
  func.func @transform_1(%arg0: i32, %arg1: i32) -> (i32, i32) {
    %c0_i32 = arith.constant 0 : i32
    %c0_i32_0 = arith.constant 0 : i32
    return %arg1, %c0_i32 : i32, i32
  }
  func.func @transform_2(%arg0: i32, %arg1: i32) -> (i32, i32) {
    %c0_i32 = arith.constant 0 : i32
    %c0_i32_0 = arith.constant 0 : i32
    return %c0_i32, %arg0 : i32, i32
  }
  func.func @transform_3(%arg0: i32, %arg1: i32) -> (i32, i32) {
    %c0_i32 = arith.constant 0 : i32
    %c0_i32_0 = arith.constant 0 : i32
    return %c0_i32, %arg0 : i32, i32
  }
  func.func @transform_4(%arg0: i32, %arg1: i32) -> (i32, i32) {
    %c0_i32 = arith.constant 0 : i32
    return %arg1, %arg0 : i32, i32
  }
}

</mosaic_0001>

<bundles_post_ra>
// kernel: tpu_custom_call.1
= control target key start
LH: loop header
LB: loop body
LE: loop exit
PB: predicated region body
PF: predicated region fallthrough
CT: control target
= control target key end

     0   :  { %9 = vsyncpa [#allocation3], 0  ;;  %s208_s0 = inlined_call_operand.vmem [shape: f32[8,1], index: 0, kind: input, shape index: {}]   ;;  %s209_s1 = inlined_call_operand.hbm [shape: bf16[8,16], index: 1, kind: input, shape index: {}]   ;;  %s210_s2 = inlined_call_operand.vmem [shape: bf16[16,128], index: 2, kind: input, shape index: {}]   ;;  %s211_s3 = inlined_call_operand.vmem [shape: f32[2,128], index: 3, kind: input, shape index: {}]   ;;  %s212_s4 = inlined_call_operand.hbm [shape: f32[8,128], index: 4, kind: output, shape index: {}]  }
   0x1   :  { %10 = vsyncpa [#allocation4], 0  ;;  %s18_s17 = sshll.u32 %s209_s1, 4  ;;  %s161_s18 = smov [#allocation2]   ;;  %s19_s17 = int_to_ptr.hbm [resolvable:$true] %s18_s17 }
   0x2   :  { %s20_s19 = sshll.u32 %s161_s18, 4  ;;  %s21_s19 = int_to_ptr.vmem [resolvable:$true] %s20_s19 }
   0x3   :  { %23 = dma.hbm_to_vmem [thread:$0]  %s19_s17, 64, %s21_s19, [#allocation3]  }
   0x4   :  { %157 = dma.done.wait [#allocation3], 64  }
   0x5   :  { %158 = vsyncadd [#allocation3], 4294967232  ;;  %v33_v0 = vld [vmem:[#allocation2] sm:$0xf]  ;;  %v101_v1 = vld [vmem:[%s210_s2] sm:$0xff]  ;;  %vm44_vm0 = vcmask 130048  }
   0x6   :  { %v61_v2 = vunpack.c.l.bf16 %v33_v0  ;;  %55 = vmatpush.bf16.msra.mxu0 %v101_v1  ;;  %v162_v3 = vmov 0.0   ;;  %v163_v6 = vmov 0   ;;  %v67_v7 = vld [vmem:[%s208_s0] sm:$0xff]  ;;  %s164_s26 = smov [#allocation5]   ;;  %s86_s0 = sshll.u32 %s212_s4, 4  ;;  %s87_s0 = int_to_ptr.hbm [resolvable:$true] %s86_s0 }
   0x7   :  { %106 = vset.pattern.permute.xlu0 %v163_v6  ;;  %v107_v13 = vld [vmem:[%s211_s3] ss:$0 sm:$0xff]  ;;  %v108_v14 = vld [vmem:[%s211_s3 + $0x1] ss:$0 sm:$0xff]  ;;  %s84_s27 = sshll.u32 %s164_s26, 4  ;;  %s85_s27 = int_to_ptr.vmem [resolvable:$true] %s84_s27 }
   0x8   :  { %vm62_vm1 = vcmp.ne.f32.partialorder %v61_v2, %v61_v2 }
   0x9   :  { %v63_v4 = vsel %vm62_vm1, 1.0, %v162_v3  ;;  %100 = vmatmul.msk.bf16.vlgmr.msra.gmra.mxu0 %vm44_vm0, %v33_v0 }
   0xa   :  { %v64_v5 = vsel %vm44_vm0, %v63_v4, -inf }
   0xb   :  { %65 = vmax.xlane.f32.xlu0 %v64_v5 }
  0x7e   :  { %v66_v8 = vpop.xlane.xlu0 %65 }
  0x7f   :  { %v68_v9 = vadd.f32 %v67_v7, %v66_v8 }
  0x81   :  { %vm69_vm2 = vcmp.gt.f32.partialorder %v68_v9, 0.5 }
  0x82   :  { %v71_v10 = vsel %vm69_vm2, 1, %v163_v6 }
  0x83   :  { %73 = vperm.xlu0 %106, %v71_v10  }
  0x86   :  { %v57_v11 = vpop.f32.mrf.mxu0 }
  0x87   :  { %v58_v15 = vadd.f32 %v107_v13, %v57_v11 }
  0x8e   :  { %v59_v12 = vpop.f32.mrf.mxu0 }
  0xf5   :  { %v74_v16 = vpop.permute.xlu0 %73 }
  0xf6   :  { %vm75_vm3 = vcmp.eq.s32.totalorder %v74_v16, 1 }
  0xf7   :  { %v77_v17 = vsel %vm75_vm3, %v108_v14, %v58_v15 }
  0xf8   :  { %78 = vst [vmem:[#allocation5] sm:$0xff] %v77_v17 }
  0xf9   :  { %89 = dma.vmem_to_hbm [thread:$0]  %s85_s27, 128, %s87_s0, [#allocation4]  }
  0xfa   :  { %159 = dma.done.wait [#allocation4], 128  }
  0xfb   :  { %160 = vsyncadd [#allocation4], 4294967168 }
  0xfc   :  { %94 = vsyncpa [#allocation3], 1 }
  0xfd   :  { %95 = vsyncpa [#allocation4], 1 }

</bundles_post_ra>
